<compile_context>
chip_gen: v7x
topology: tpu7x:2x2x1
jax: 0.10.0
libtpu: 0.0.40
codegen_flags: <defaults>
</compile_context>

<pallas_src>
import functools
import math

import jax
import jax.numpy as jnp
import numpy as np
from jax.experimental import pallas as pl
from jax.experimental.pallas import tpu as pltpu


def _round_up(x, m):
    return (x + m - 1) // m * m


def _sublane_align(itemsize):
    # f32 -> 8 sublanes, bf16 -> 16, int8/fp8 -> 32 (packed-dtype tiling).
    return max(8, 32 // max(int(itemsize), 1))


def _pick_fold(batch, d):
    """Rows-into-lanes folding factor r: consecutive rows packed along lanes.

    Picks the largest r <= 128//d that divides the batch (so no pad is needed).
    """
    if d >= 128:
        return 1
    target = max(1, 128 // d)
    for r in range(min(target, batch), 0, -1):
        if batch % r == 0:
            return r
    return 1


def _vmem_budget():
    """(max_tile_bytes per input buffer, vmem_limit_bytes) per TPU generation."""
    kind = ""
    try:
        kind = jax.devices()[0].device_kind.lower()
    except Exception:
        pass
    if "v5 lite" in kind or "v5e" in kind or "v5litepod" in kind:
        return 6 << 20, 32 << 20     # slower HBM; raise past 16 MiB scoped default
    if "v6" in kind:
        return 10 << 20, 40 << 20    # 2x double-buffered stays inside 40 MiB
    if "v7" in kind or "7x" in kind:
        return 12 << 20, 48 << 20    # 64 MiB physical per TC -> cap well below
    return 8 << 20, 32 << 20         # unknown: conservative


def _choose_tile_rows(rows, padded_row_bytes, align, max_tile_bytes):
    """Pick the grid row-tile.  Returns (tile_rows, need_pad)."""
    cap = (max_tile_bytes // max(padded_row_bytes, 1)) // align * align
    cap = max(align, cap)
    if rows <= cap:
        return rows, False                       # single full-extent tile (always legal)
    for t in range(cap, align - 1, -align):
        if rows % t == 0:
            return t, False                      # dividing tile -> no jnp.pad copy
    return cap, True                             # last resort: pad the row dim


def _pdf_kernel(x_ref, seg_ref, out_ref, *, mean, std, log_norm):
    # Stream the tile in its native dtype; upcast on the VPU.
    x = x_ref[...].astype(jnp.float32)                       # (T, W)
    if mean == 0.0 and std == 1.0:
        y = x                                                # module defaults
    else:
        y = x * std + mean                                   # direct undo_rescale
    # Segmented per-row sum of squares on the MXU: seg is block-diagonal ones,
    # column j sums lanes [j*D, (j+1)*D).
    quad = jnp.dot(y * y, seg_ref[...],
                   preferred_element_type=jnp.float32)       # (T, r)
    out_ref[...] = jnp.exp(log_norm - 0.5 * quad)            # (T, r)


def pdf_forward(x, mean=0.0, std=1.0, *, tile_rows=None):
    """x: (B, 1, D) array -> (B, 1) pdf values (float32)."""
    B, one, D = x.shape
    assert one == 1, "expected B x 1 x D input"
    dtype = x.dtype

    # Fold consecutive rows into the lane dim (free row-major view).
    r = _pick_fold(B, D)
    W = r * D
    rows = B // r
    x2d = x.reshape(rows, W)                                  # native dtype, no copy

    max_tile_bytes, vmem_limit = _vmem_budget()
    align = _sublane_align(dtype.itemsize)
    padded_row_bytes = _round_up(W, 128) * dtype.itemsize     # real VMEM footprint
    if tile_rows is None:
        tile_rows, need_pad = _choose_tile_rows(rows, padded_row_bytes, align,
                                                max_tile_bytes)
    else:
        need_pad = rows % tile_rows != 0

    num_tiles = pl.cdiv(rows, tile_rows)
    rows_pad = num_tiles * tile_rows
    if need_pad and rows_pad != rows:
        # Last resort only (extra HBM read+write of the whole input).
        x2d = jnp.pad(x2d, ((0, rows_pad - rows), (0, 0)))

    # Block-diagonal segment-sum matrix (W, r): column j is 1 on rows
    # [j*D, (j+1)*D).  Tiny; stays VMEM-resident across grid steps.
    seg_np = np.zeros((W, r), np.float32)
    for j in range(r):
        seg_np[j * D:(j + 1) * D, j] = 1.0
    seg = jnp.asarray(seg_np)

    log_norm = -0.5 * D * math.log(2.0 * math.pi)
    kernel = functools.partial(_pdf_kernel, mean=float(mean), std=float(std),
                               log_norm=log_norm)

    out = pl.pallas_call(
        kernel,
        out_shape=jax.ShapeDtypeStruct((rows_pad, r), jnp.float32),
        grid=(num_tiles,),
        in_specs=[pl.BlockSpec((tile_rows, W), lambda i: (i, 0)),
                  pl.BlockSpec((W, r), lambda i: (0, 0))],
        out_specs=pl.BlockSpec((tile_rows, r), lambda i: (i, 0)),
        compiler_params=pltpu.CompilerParams(
            dimension_semantics=("parallel",),
            vmem_limit_bytes=vmem_limit),
    )(x2d, seg)

    # (rows, r) row-major == original batch order -> (B, 1).
    return out[:rows].reshape(B, 1)


def pdf_forward_ref(x, mean=0.0, std=1.0):
    """Pure-JAX reference for correctness checking."""
    y = x.reshape(x.shape[0], x.shape[-1]).astype(jnp.float32) * std + mean
    D = y.shape[-1]
    log_norm = -0.5 * D * jnp.log(2.0 * jnp.pi)
    return jnp.exp(log_norm - 0.5 * jnp.sum(y * y, axis=-1, keepdims=True))


if __name__ == "__main__":
    key = jax.random.PRNGKey(0)
    k1, k2, k3, k4 = jax.random.split(key, 4)

    # 1) Module-shaped small input, non-trivial rescale; D=16 folds r=8 -> W=128.
    B, D = 8, 16
    x = jax.random.normal(k1, (B, 1, D), dtype=jnp.float32)
    out = jax.block_until_ready(pdf_forward(x, mean=0.25, std=1.5))
    ref = pdf_forward_ref(x, mean=0.25, std=1.5)
    np.testing.assert_allclose(np.asarray(out), np.asarray(ref), rtol=2e-4, atol=0.0)
    assert out.shape == (B, 1)

    # 2) bf16 input, multi-step pipelined grid (forced small tile), default mean/std.
    B2, D2 = 128, 32
    x2 = jax.random.normal(k2, (B2, 1, D2), dtype=jnp.bfloat16)
    out2 = jax.block_until_ready(pdf_forward(x2, tile_rows=16))
    ref2 = pdf_forward_ref(x2)
    np.testing.assert_allclose(np.asarray(out2), np.asarray(ref2), rtol=2e-3, atol=0.0)
    assert out2.shape == (B2, 1)

    # 3) D not a divisor of 128 (W = r*D not lane-aligned; full-extent block).
    B3, D3 = 10, 24
    x3 = jax.random.normal(k3, (B3, 1, D3), dtype=jnp.float32)
    out3 = jax.block_until_ready(pdf_forward(x3, mean=-0.1, std=0.7))
    ref3 = pdf_forward_ref(x3, mean=-0.1, std=0.7)
    np.testing.assert_allclose(np.asarray(out3), np.asarray(ref3), rtol=2e-4, atol=0.0)

    # 4) D >= 128: no lane folding (r=1).  Non-log density underflows to 0 in f32
    #    for standard-normal inputs at this D — matches the reference exactly.
    B4, D4 = 16, 128
    x4 = jax.random.normal(k4, (B4, 1, D4), dtype=jnp.float32)
    out4 = jax.block_until_ready(pdf_forward(x4))
    ref4 = pdf_forward_ref(x4)
    np.testing.assert_allclose(np.asarray(out4), np.asarray(ref4), rtol=2e-4, atol=1e-35)

    print("KERNEL_OK")
</pallas_src>

<mosaic_0001>
module attributes {stable_mosaic.version = 11 : i64} {
  func.func @_pdf_kernel(%arg0: i32, %arg1: memref<1x128xf32, #tpu.memory_space<vmem>>, %arg2: memref<128x8xf32, #tpu.memory_space<vmem>>, %arg3: memref<1x8xf32, #tpu.memory_space<vmem>>) attributes {dimension_semantics = [#tpu.dimension_semantics<parallel>], iteration_bounds = array<i64: 1>, scalar_prefetch = 0 : i64, scratch_operands = 0 : i64, tpu.core_type = #tpu.core_type<tc>, window_params = [{transform_indices = @transform_0, window_bounds = array<i64: 1, 128>}, {pipeline_mode = #tpu.pipeline_mode<synchronous>, transform_indices = @transform_1, window_bounds = array<i64: 128, 8>}, {transform_indices = @transform_2, window_bounds = array<i64: 1, 8>}]} {
    %c0 = arith.constant 0 : index
    %c0_0 = arith.constant 0 : index
    %0 = vector.load %arg1[%c0, %c0_0] : memref<1x128xf32, #tpu.memory_space<vmem>>, vector<1x128xf32>
    %cst = arith.constant 1.500000e+00 : f32
    %1 = vector.broadcast %cst : f32 to vector<1x128xf32>
    %2 = arith.mulf %0, %1 : vector<1x128xf32>
    %cst_1 = arith.constant 2.500000e-01 : f32
    %3 = vector.broadcast %cst_1 : f32 to vector<1x128xf32>
    %4 = arith.addf %2, %3 : vector<1x128xf32>
    %5 = arith.mulf %4, %4 : vector<1x128xf32>
    %c0_2 = arith.constant 0 : index
    %c0_3 = arith.constant 0 : index
    %6 = vector.load %arg2[%c0_2, %c0_3] : memref<128x8xf32, #tpu.memory_space<vmem>>, vector<128x8xf32>
    %cst_4 = arith.constant dense<0.000000e+00> : vector<1x8xf32>
    %7 = tpu.matmul %5, %6, %cst_4 {dimension_numbers = #tpu.dot_dimension_numbers<[1], [0], [0], [1], [0, 0, 1, 1], [], []>} : vector<1x128xf32>, vector<128x8xf32>, vector<1x8xf32> -> vector<1x8xf32>
    %cst_5 = arith.constant 5.000000e-01 : f32
    %8 = vector.broadcast %cst_5 : f32 to vector<1x8xf32>
    %9 = arith.mulf %8, %7 : vector<1x8xf32>
    %cst_6 = arith.constant -14.7030163 : f32
    %10 = vector.broadcast %cst_6 : f32 to vector<1x8xf32>
    %11 = arith.subf %10, %9 : vector<1x8xf32>
    %12 = math.exp %11 : vector<1x8xf32>
    %c0_7 = arith.constant 0 : index
    %c0_8 = arith.constant 0 : index
    %13 = vector.load %arg3[%c0_7, %c0_8] : memref<1x8xf32, #tpu.memory_space<vmem>>, vector<1x8xf32>
    tpu.vector_store %arg3[%c0_7, %c0_8], %12 {strides = array<i32>} : memref<1x8xf32, #tpu.memory_space<vmem>>, vector<1x8xf32>,
    return
  }
  func.func @transform_0(%arg0: i32) -> (i32, i32) {
    %c0_i32 = arith.constant 0 : i32
    %c0_i32_0 = arith.constant 0 : i32
    return %arg0, %c0_i32 : i32, i32
  }
  func.func @transform_1(%arg0: i32) -> (i32, i32) {
    %c0_i32 = arith.constant 0 : i32
    %c0_i32_0 = arith.constant 0 : i32
    %c0_i32_1 = arith.constant 0 : i32
    return %c0_i32, %c0_i32_0 : i32, i32
  }
  func.func @transform_2(%arg0: i32) -> (i32, i32) {
    %c0_i32 = arith.constant 0 : i32
    %c0_i32_0 = arith.constant 0 : i32
    return %arg0, %c0_i32 : i32, i32
  }
}

</mosaic_0001>

<bundles_post_ra>
// kernel: tpu_custom_call.1
= control target key start
LH: loop header
LB: loop body
LE: loop exit
PB: predicated region body
PF: predicated region fallthrough
CT: control target
= control target key end

     0   :  { %v228_v3 = vmov 0.0|0.0   ;;  %vm229_vm0 = vmmov 0   ;;  %v230_v6 = vmov 0.0   ;;  %s310_s0 = inlined_call_operand.vmem [shape: f32[1,128], index: 0, kind: input, shape index: {}]   ;;  %s311_s1 = inlined_call_operand.vmem [shape: f32[128,8], index: 1, kind: input, shape index: {}]   ;;  %s312_s2 = inlined_call_operand.hbm [shape: f32[1,8], index: 2, kind: output, shape index: {}]  }
   0x1   :  { %v16_v0 = vld [vmem:[%s311_s1] sm:$0xff]  ;;  %v17_v1 = vld [vmem:[%s311_s1 + $0x8] sm:$0xff]  ;;  %v18_v2 = vld [vmem:[%s311_s1 + $0x10] sm:$0xff]  ;;  %174 = vmatprep.subr.bf16.mxu0 %v228_v3  ;;  %171 = vmatprep.mubr.msk.f32.mxu0 %vm229_vm0, %v230_v6 }
   0x2   :  { %v175_v4 = vpack.c.bf16 %v17_v1, %v16_v0  ;;  %v19_v5 = vld [vmem:[%s311_s1 + $0x18] sm:$0xff]  ;;  %v20_v8 = vld [vmem:[%s311_s1 + $0x20] sm:$0xff]  ;;  %v21_v9 = vld [vmem:[%s311_s1 + $0x28] sm:$0xff] }
   0x3   :  { %v178_v7 = vpack.c.bf16 %v19_v5, %v18_v2 }
   0x4   :  { %176 = vmatpush3.bf16.msra.mxu0 %v175_v4 }
   0x5   :  { %177 = vmatprep.subr.bf16.mxu0 %v228_v3 }
   0x6   :  { %7 = vsyncpa [#allocation3], 0  ;;  %v181_v10 = vpack.c.bf16 %v21_v9, %v20_v8  ;;  %v22_v11 = vld [vmem:[%s311_s1 + $0x30] sm:$0xff]  ;;  %v23_v12 = vld [vmem:[%s311_s1 + $0x38] sm:$0xff]  ;;  %vm106_vm1 = vcmask 57344  }
   0x7   :  { %v184_v13 = vpack.c.bf16 %v23_v12, %v22_v11  ;;  %v24_v14 = vld [vmem:[%s311_s1 + $0x40] sm:$0xff]  ;;  %v25_v15 = vld [vmem:[%s311_s1 + $0x48] sm:$0xff]  ;;  %v26_v17 = vld [vmem:[%s311_s1 + $0x50] sm:$0xff] }
   0x8   :  { %179 = vmatpush3.bf16.msra.mxu0 %v178_v7  ;;  %v187_v16 = vpack.c.bf16 %v25_v15, %v24_v14  ;;  %v27_v18 = vld [vmem:[%s311_s1 + $0x58] sm:$0xff]  ;;  %v12_v20 = vld [vmem:[%s310_s0] sm:$0x1]  ;;  %v29_v22 = vld [vmem:[%s311_s1 + $0x68] sm:$0xff]  ;;  %s231_s0 = smov [#allocation2]  }
   0x9   :  { %180 = vmatprep.subr.bf16.mxu0 %v228_v3  ;;  %v190_v19 = vpack.c.bf16 %v27_v18, %v26_v17  ;;  %v28_v21 = vld [vmem:[%s311_s1 + $0x60] sm:$0xff]  ;;  %v13_v23 = vmul.f32 1.5, %v12_v20  ;;  %v30_v25 = vld [vmem:[%s311_s1 + $0x70] sm:$0xff]  ;;  %v31_v26 = vld [vmem:[%s311_s1 + $0x78] sm:$0xff]  ;;  %s114_s15 = sshll.u32 %s231_s0, 4  ;;  %s115_s15 = int_to_ptr.vmem [resolvable:$true] %s114_s15 }
   0xa   :  { %v193_v24 = vpack.c.bf16 %v29_v22, %v28_v21  ;;  %v196_v28 = vpack.c.bf16 %v31_v26, %v30_v25  ;;  %s204_s1 = scalar_lea.vmem %s115_s15, 16  ;;  %s208_s16 = scalar_lea.vmem %s115_s15, 32 }
   0xb   :  { %v14_v27 = vadd.f32 0.25, %v13_v23  ;;  %p205_p0 = scmp.ne.s32.totalorder %s115_s15, %s204_s1  ;;  %p209_p1 = scmp.lt.s32.totalorder %s115_s15, %s115_s15 }
   0xc   :  { %182 = vmatpush3.bf16.msra.mxu0 %v181_v10  ;;  %p210_p2 = scmp.lt.s32.totalorder %s208_s16, %s204_s1 }
   0xd   :  { %183 = vmatprep.subr.bf16.mxu0 %v228_v3  ;;  %v15_v29 = vmul.f32 %v14_v27, %v14_v27 }
   0xe   :  { %p211_p3 = por %p210_p2, %p209_p1 }
  0x10   :  { %185 = vmatpush3.bf16.msra.mxu0 %v184_v13  ;;  %p212_p4 = pnand %p211_p3, %p205_p0 }
  0x11   :  { %186 = vmatprep.subr.bf16.mxu0 %v228_v3 }
  0x14   :  { %188 = vmatpush3.bf16.msra.mxu0 %v187_v16 }
  0x15   :  { %189 = vmatprep.subr.bf16.mxu0 %v228_v3 }
  0x18   :  { %191 = vmatpush3.bf16.msra.mxu0 %v190_v19 }
  0x19   :  { %192 = vmatprep.subr.bf16.mxu0 %v228_v3 }
  0x1c   :  { %194 = vmatpush3.bf16.msra.mxu0 %v193_v24 }
  0x1d   :  { %195 = vmatprep.subr.bf16.mxu0 %v228_v3 }
  0x20   :  { %197 = vmatpush3.bf16.msra.mxu0 %v196_v28 }
  0x23   :  { %172 = vmatmul.mubr.f32.vlgmr.msra.gmra.mrb[0].mxu0 %v15_v29 }
  0xf6   :  { %v98_v30 = vpop.f32.mrb[0].mxu0 }
  0xf7   :  { %v102_v31 = vmul.f32 0.5, %v98_v30  ;;  %v173_v32 = vpop.f32.mrb[1].mxu0 }
  0xf9   :  { %v103_v33 = vsub.f32 -14.703016, %v102_v31 }
  0xfb   :  { %v104_v34 = vmul.f32 1.442695, %v103_v33 }
  0xfd   :  { %202 = vpow2.f32 %v104_v34 }
 0x107   :  { %v203_v35 = vpop.eup %202 }
 0x108   :  { %107 = vst.msk [vmem:[#allocation2] sm:$0x1] %vm106_vm1, %v203_v35 }
 0x109   :  { %215 = shalt.err (!%p212_p4)
}
 0x10a   :  { %s216_s19 = scalar_lea.hbm %s312_s2, 16 }
 0x10b   :  { %p217_p5 = scmp.ne.s32.totalorder %s312_s2, %s216_s19  ;;  %p220_p6 = scmp.lt.u32.totalorder %s216_s19, %s312_s2 }
 0x10d   :  { %p222_p7 = pnand %p220_p6, %p217_p5 }
 0x10f   :  { %225 = shalt.err (!%p222_p7)
}
 0x110   :  { %117 = dma.vmem_to_hbm [thread:$0]  %s115_s15, 16, %s312_s2, [#allocation3]  }
 0x111   :  { %226 = dma.done.wait [#allocation3], 16  }
 0x112   :  { %227 = vsyncadd [#allocation3], 4294967280 }
 0x113   :  { %121 = vsyncpa [#allocation3], 1 }

</bundles_post_ra>
